<compile_context>
chip_gen: v6e
topology: v6e:2x2x1
jax: 0.10.0
libtpu: 0.0.40
codegen_flags: <defaults>
</compile_context>

<pallas_src>
import functools

import jax
import jax.numpy as jnp
from jax.experimental import pallas as pl
from jax.experimental.pallas import tpu as pltpu

_LANE = 128
_SUBLANE = 8


def _round_up(x, m):
    return (x + m - 1) // m * m


def _pick_batch_tile(b_pad, cap=1024):
    """Largest multiple-of-8 divisor of b_pad, <= cap, targeting >=~4 grid steps.

    >=2 steps lets v7x megacore shard the 'parallel' batch axis and gives the
    pipeliner something to double-buffer on every generation; the cap keeps the
    x/out tiles large enough to amortize the ~0.35us per-grid-step overhead.
    """
    if b_pad <= 2 * _SUBLANE:
        return b_pad
    target = min(cap, max(_SUBLANE, b_pad // 4))
    tb = _SUBLANE
    t = _SUBLANE
    while t <= target:
        if b_pad % t == 0:
            tb = t
        t += _SUBLANE
    return tb


def fpn_kernel(x_ref, w1_ref, b1_ref, w2_ref, b2_ref, o_ref):
    # fc1: [TB, K] @ [K, H] + [1, H]  (MXU, f32 accumulate; K left unpadded)
    h = jnp.dot(x_ref[...], w1_ref[...], preferred_element_type=jnp.float32)
    h = h + b1_ref[...]
    # dropout: identity at inference (PyTorch nn.Dropout eval mode)
    # TODO(synk): training-mode dropout (pltpu.prng_seed + prng_random_bits
    #             inverted-dropout mask) not implemented.
    h = jnp.maximum(h, 0.0)  # f32 elementwise path (v5e has no bf16 VPU)
    # fc2: [TB, H] @ [H, N] + [1, N]
    out = jnp.dot(h, w2_ref[...], preferred_element_type=jnp.float32) + b2_ref[...]
    o_ref[...] = out.astype(o_ref.dtype)


def prepare_fpn_params(w1, b1, w2, b2):
    """Pad weights/biases to lane-dense (128) hidden/out dims ONCE at init.

    Hoisted out of the per-call path so the forward does not re-pad weights
    (a per-call XLA HBM round-trip comparable to the kernel's own weight DMA).
    """
    fp_dim, hidden = w1.shape
    out_dim = w2.shape[1]
    H = _round_up(hidden, _LANE)
    N = _round_up(out_dim, _LANE)
    w1p = jnp.pad(w1.astype(jnp.float32), ((0, 0), (0, H - hidden)))
    b1p = jnp.pad(jnp.reshape(b1, (1, -1)).astype(jnp.float32),
                  ((0, 0), (0, H - hidden)))
    w2p = jnp.pad(w2.astype(jnp.float32), ((0, H - hidden), (0, N - out_dim)))
    b2p = jnp.pad(jnp.reshape(b2, (1, -1)).astype(jnp.float32),
                  ((0, 0), (0, N - out_dim)))
    return (w1p, b1p, w2p, b2p), out_dim


@functools.partial(jax.jit, static_argnames=("out_dim",))
def fpn_forward(x, params, out_dim):
    """x: [B, fp_dim] f32 (unpadded); params: output of prepare_fpn_params.
    Returns [B, out_dim] f32 — same semantics as PyTorch FPN.forward (eval mode)."""
    w1p, b1p, w2p, b2p = params
    B, K = x.shape            # K = fp_dim, kept unpadded (contraction dim)
    H = w1p.shape[1]
    N = w2p.shape[1]

    # Pad batch only to the sublane granule; pick TB as a divisor of B_pad so
    # no junk rows are DMA'd / computed / written back.
    B_pad = _round_up(B, _SUBLANE)
    xp = x if B_pad == B else jnp.pad(x, ((0, B_pad - B), (0, 0)))
    TB = _pick_batch_tile(B_pad)
    grid = (B_pad // TB,)

    flops = 2 * B_pad * (K * H + H * N)
    bytes_accessed = 4 * (B_pad * K + K * H + H + H * N + N + B_pad * N)

    out_padded = pl.pallas_call(
        fpn_kernel,
        out_shape=jax.ShapeDtypeStruct((B_pad, N), jnp.float32),
        grid=grid,
        in_specs=[
            pl.BlockSpec((TB, K), lambda i: (i, 0)),   # x tile, K unpadded
            pl.BlockSpec((K, H), lambda i: (0, 0)),    # W1 (VMEM-resident)
            pl.BlockSpec((1, H), lambda i: (0, 0)),    # b1 (resident)
            pl.BlockSpec((H, N), lambda i: (0, 0)),    # W2 (resident)
            pl.BlockSpec((1, N), lambda i: (0, 0)),    # b2 (resident)
        ],
        out_specs=pl.BlockSpec((TB, N), lambda i: (i, 0)),  # lane-dense stores
        compiler_params=pltpu.CompilerParams(
            dimension_semantics=("parallel",),   # megacore shards the batch axis
            # no vmem_limit override: footprint << default scoped VMEM on all gens
        ),
        cost_estimate=pl.CostEstimate(
            flops=flops, transcendentals=0, bytes_accessed=bytes_accessed),
    )(xp, w1p, b1p, w2p, b2p)

    # Slice padded lanes / padded batch rows back off outside the kernel.
    return out_padded[:B, :out_dim]


def init_fpn_params(key, fp_dim, hidden_dim, out_dim):
    # nn.Linear-style init (uniform +/- 1/sqrt(fan_in)); weights stored
    # [in_features, out_features] so the kernel computes x @ W + b.
    k1, k2, k3, k4 = jax.random.split(key, 4)
    bound1 = 1.0 / jnp.sqrt(fp_dim)
    bound2 = 1.0 / jnp.sqrt(hidden_dim)
    w1 = jax.random.uniform(k1, (fp_dim, hidden_dim), jnp.float32, -bound1, bound1)
    b1 = jax.random.uniform(k2, (hidden_dim,), jnp.float32, -bound1, bound1)
    w2 = jax.random.uniform(k3, (hidden_dim, out_dim), jnp.float32, -bound2, bound2)
    b2 = jax.random.uniform(k4, (out_dim,), jnp.float32, -bound2, bound2)
    return w1, b1, w2, b2


if __name__ == "__main__":
    key = jax.random.PRNGKey(0)
    k_x, k_p = jax.random.split(key)

    # Shapes consistent with the module (fp_list -> [batch, fp_dim]); batch of
    # 256 exercises the multi-step batch-tiled path (TB=64, grid=(4,)).
    batch, fp_dim, hidden_dim, out_dim = 256, 32, 32, 16
    x = jax.random.uniform(k_x, (batch, fp_dim), jnp.float32)  # fingerprint bits

    w1, b1, w2, b2 = init_fpn_params(k_p, fp_dim, hidden_dim, out_dim)
    params, out_dim_static = prepare_fpn_params(w1, b1, w2, b2)  # pad ONCE

    out = fpn_forward(x, params, out_dim_static)
    jax.block_until_ready(out)

    # Reference check (eval-mode dropout = identity).  Reference dots use HIGHEST
    # precision (true f32); kernel MXU f32 dots may use bf16 passes at default
    # precision, hence the modest tolerance.
    hi = jax.lax.Precision.HIGHEST
    ref = jnp.dot(jnp.maximum(jnp.dot(x, w1, precision=hi) + b1[None, :], 0.0),
                  w2, precision=hi) + b2[None, :]
    assert out.shape == (batch, out_dim)
    assert jnp.allclose(out, ref, atol=2e-2, rtol=2e-2), \
        float(jnp.max(jnp.abs(out - ref)))

    print("KERNEL_OK")
</pallas_src>

<mosaic_0001>
module attributes {stable_mosaic.version = 11 : i64} {
  func.func @fpn_kernel(%arg0: i32, %arg1: memref<64x32xf32, #tpu.memory_space<vmem>>, %arg2: memref<32x128xf32, #tpu.memory_space<vmem>>, %arg3: memref<1x128xf32, #tpu.memory_space<vmem>>, %arg4: memref<128x128xf32, #tpu.memory_space<vmem>>, %arg5: memref<1x128xf32, #tpu.memory_space<vmem>>, %arg6: memref<64x128xf32, #tpu.memory_space<vmem>>) attributes {dimension_semantics = [#tpu.dimension_semantics<parallel>], iteration_bounds = array<i64: 4>, scalar_prefetch = 0 : i64, scratch_operands = 0 : i64, tpu.core_type = #tpu.core_type<tc>, window_params = [{transform_indices = @transform_0, window_bounds = array<i64: 64, 32>}, {pipeline_mode = #tpu.pipeline_mode<synchronous>, transform_indices = @transform_1, window_bounds = array<i64: 32, 128>}, {pipeline_mode = #tpu.pipeline_mode<synchronous>, transform_indices = @transform_2, window_bounds = array<i64: 1, 128>}, {pipeline_mode = #tpu.pipeline_mode<synchronous>, transform_indices = @transform_3, window_bounds = array<i64: 128, 128>}, {pipeline_mode = #tpu.pipeline_mode<synchronous>, transform_indices = @transform_4, window_bounds = array<i64: 1, 128>}, {transform_indices = @transform_5, window_bounds = array<i64: 64, 128>}]} {
    %c0 = arith.constant 0 : index
    %c0_0 = arith.constant 0 : index
    %0 = vector.load %arg1[%c0, %c0_0] : memref<64x32xf32, #tpu.memory_space<vmem>>, vector<64x32xf32>
    %c0_1 = arith.constant 0 : index
    %c0_2 = arith.constant 0 : index
    %1 = vector.load %arg2[%c0_1, %c0_2] : memref<32x128xf32, #tpu.memory_space<vmem>>, vector<32x128xf32>
    %cst = arith.constant dense<0.000000e+00> : vector<64x128xf32>
    %2 = tpu.matmul %0, %1, %cst {dimension_numbers = #tpu.dot_dimension_numbers<[1], [0], [0], [1], [0, 0, 1, 1], [], []>} : vector<64x32xf32>, vector<32x128xf32>, vector<64x128xf32> -> vector<64x128xf32>
    %c0_3 = arith.constant 0 : index
    %c0_4 = arith.constant 0 : index
    %3 = vector.load %arg3[%c0_3, %c0_4] : memref<1x128xf32, #tpu.memory_space<vmem>>, vector<1x128xf32>
    %4 = vector.broadcast %3 : vector<1x128xf32> to vector<64x128xf32>
    %5 = arith.addf %2, %4 : vector<64x128xf32>
    %cst_5 = arith.constant 0.000000e+00 : f32
    %6 = vector.broadcast %cst_5 : f32 to vector<64x128xf32>
    %7 = arith.maximumf %5, %6 : vector<64x128xf32>
    %c0_6 = arith.constant 0 : index
    %c0_7 = arith.constant 0 : index
    %8 = vector.load %arg4[%c0_6, %c0_7] : memref<128x128xf32, #tpu.memory_space<vmem>>, vector<128x128xf32>
    %cst_8 = arith.constant dense<0.000000e+00> : vector<64x128xf32>
    %9 = tpu.matmul %7, %8, %cst_8 {dimension_numbers = #tpu.dot_dimension_numbers<[1], [0], [0], [1], [0, 0, 1, 1], [], []>} : vector<64x128xf32>, vector<128x128xf32>, vector<64x128xf32> -> vector<64x128xf32>
    %c0_9 = arith.constant 0 : index
    %c0_10 = arith.constant 0 : index
    %10 = vector.load %arg5[%c0_9, %c0_10] : memref<1x128xf32, #tpu.memory_space<vmem>>, vector<1x128xf32>
    %11 = vector.broadcast %10 : vector<1x128xf32> to vector<64x128xf32>
    %12 = arith.addf %9, %11 : vector<64x128xf32>
    %c0_11 = arith.constant 0 : index
    %c0_12 = arith.constant 0 : index
    %13 = vector.load %arg6[%c0_11, %c0_12] : memref<64x128xf32, #tpu.memory_space<vmem>>, vector<64x128xf32>
    tpu.vector_store %arg6[%c0_11, %c0_12], %12 {strides = array<i32>} : memref<64x128xf32, #tpu.memory_space<vmem>>, vector<64x128xf32>,
    return
  }
  func.func @transform_0(%arg0: i32) -> (i32, i32) {
    %c0_i32 = arith.constant 0 : i32
    %c0_i32_0 = arith.constant 0 : i32
    return %arg0, %c0_i32 : i32, i32
  }
  func.func @transform_1(%arg0: i32) -> (i32, i32) {
    %c0_i32 = arith.constant 0 : i32
    %c0_i32_0 = arith.constant 0 : i32
    %c0_i32_1 = arith.constant 0 : i32
    return %c0_i32, %c0_i32_0 : i32, i32
  }
  func.func @transform_2(%arg0: i32) -> (i32, i32) {
    %c0_i32 = arith.constant 0 : i32
    %c0_i32_0 = arith.constant 0 : i32
    %c0_i32_1 = arith.constant 0 : i32
    return %c0_i32, %c0_i32_0 : i32, i32
  }
  func.func @transform_3(%arg0: i32) -> (i32, i32) {
    %c0_i32 = arith.constant 0 : i32
    %c0_i32_0 = arith.constant 0 : i32
    %c0_i32_1 = arith.constant 0 : i32
    return %c0_i32, %c0_i32_0 : i32, i32
  }
  func.func @transform_4(%arg0: i32) -> (i32, i32) {
    %c0_i32 = arith.constant 0 : i32
    %c0_i32_0 = arith.constant 0 : i32
    %c0_i32_1 = arith.constant 0 : i32
    return %c0_i32, %c0_i32_0 : i32, i32
  }
  func.func @transform_5(%arg0: i32) -> (i32, i32) {
    %c0_i32 = arith.constant 0 : i32
    %c0_i32_0 = arith.constant 0 : i32
    return %arg0, %c0_i32 : i32, i32
  }
}

</mosaic_0001>

<bundles_post_ra>
// kernel: fpn_forward.1
= control target key start
LH: loop header
LB: loop body
LE: loop exit
PB: predicated region body
PF: predicated region fallthrough
CT: control target
= control target key end

     0   :  { %s776_s18 = smov 0   ;;  %s884_s0 = inlined_call_operand.vmem [shape: f32[256,32], index: 0, kind: input, shape index: {}]   ;;  %s885_s1 = inlined_call_operand.vmem [shape: f32[32,128], index: 1, kind: input, shape index: {}]   ;;  %s886_s2 = inlined_call_operand.vmem [shape: f32[1,128], index: 2, kind: input, shape index: {}]   ;;  %s887_s3 = inlined_call_operand.vmem [shape: f32[128,128], index: 3, kind: input, shape index: {}]   ;;  %s888_s4 = inlined_call_operand.vmem [shape: f32[1,128], index: 4, kind: input, shape index: {}]   ;;  %s889_s5 = inlined_call_operand.vmem [shape: f32[256,128], index: 5, kind: output, shape index: {}]  }
   0x1 LB: > { %s577_s19 = sadd.s32 4294967295, %s744_s18   ;;  %p581_p0 = scmp.ge.s32.totalorder %s744_s18, 1  ;;  %s744_s18 = sphi %s776_s18, %s15_s18  }
   0x2   : > { %p188_p1 = scmp.lt.s32.totalorder %s744_s18, 5 }
   0x4   : > { %p189_p2 = pnand %p581_p0, %p188_p1 }
   0x5   : > { %s582_s24 = sshll.u32 (!%p189_p2), %s577_s19, 3 }
   0x6   : > { %192 = sbr.rel (%p189_p2) target bundleno = 430 (0x1ae), region = 40  ;;  %p217_p3 = scmp.lt.s32.totalorder (!%p189_p2), %s582_s24, 31 }
   0xb   : > { %v239_v0 = vld [vmem:[%s885_s1 + $0x18] sm:$0xff]  ;;  %v238_v1 = vld [vmem:[%s885_s1 + $0x10] sm:$0xff]  ;;  %v237_v3 = vld [vmem:[%s885_s1 + $0x8] sm:$0xff]  ;;  %s891_s24 = smov (!%p217_p3, %s582_s24), 31  ;;  %vm247_vm0 = vcmask 261120  }
   0xc   : > { %634 = vmatprep.subr.mxu0 %v239_v0  ;;  %v400_v2 = vld [vmem:[%s887_s3 + $0x78] sm:$0xff]  ;;  %v399_v4 = vld [vmem:[%s887_s3 + $0x70] sm:$0xff]  ;;  %v236_v5 = vld [vmem:[%s885_s1] sm:$0xff]  ;;  %s583_s8 = sshll.u32 %s891_s24, 3 }
   0xd   : > { %635 = vmatpush3.msra.mxu0 %v239_v0  ;;  %698 = vmatprep.subr.mxu1 %v400_v2  ;;  %v398_v6 = vld [vmem:[%s887_s3 + $0x68] sm:$0xff]  ;;  %s813_s13 = scalar_lea.vmem %s884_s0, %s583_s8  ;;  %v397_v11 = vld [vmem:[%s887_s3 + $0x60] sm:$0xff]  ;;  %v396_v14 = vld [vmem:[%s887_s3 + $0x58] sm:$0xff]  ;;  %s226_s26 = scalar_lea.vmem %s889_s5, %s583_s8 }
   0xe   : > { %636 = vmatprep.subr.mxu0 %v238_v1  ;;  %714 = vmatpush3.msra.mxu1 %v400_v2  ;;  %v228_v7 = vld [vmem:[%s813_s13] sm:$0xff]  ;;  %v229_v8 = vld [vmem:[%s813_s13 + $0x8] sm:$0xff]  ;;  %v230_v9 = vld [vmem:[%s813_s13 + $0x10] sm:$0xff] }
   0xf   : > { %637 = vmatpush3.msra.mxu0 %v238_v1  ;;  %699 = vmatprep.subr.mxu1 %v399_v4  ;;  %v231_v10 = vld [vmem:[%s813_s13 + $0x18] sm:$0xff]  ;;  %v232_v12 = vld [vmem:[%s813_s13 + $0x20] sm:$0xff]  ;;  %v233_v13 = vld [vmem:[%s813_s13 + $0x28] sm:$0xff] }
  0x10   : > { %638 = vmatprep.subr.mxu0 %v237_v3  ;;  %715 = vmatpush3.msra.mxu1 %v399_v4  ;;  %v234_v15 = vld [vmem:[%s813_s13 + $0x30] sm:$0xff]  ;;  %v235_v17 = vld [vmem:[%s813_s13 + $0x38] sm:$0xff]  ;;  %v394_v18 = vld [vmem:[%s887_s3 + $0x48] sm:$0xff] }
  0x11   : > { %639 = vmatpush3.msra.mxu0 %v237_v3  ;;  %700 = vmatprep.subr.mxu1 %v398_v6  ;;  %v395_v16 = vld [vmem:[%s887_s3 + $0x50] sm:$0xff]  ;;  %v393_v19 = vld [vmem:[%s887_s3 + $0x40] sm:$0xff]  ;;  %v392_v20 = vld [vmem:[%s887_s3 + $0x38] sm:$0xff] }
  0x12   : > { %640 = vmatprep.subr.mxu0 %v236_v5  ;;  %716 = vmatpush3.msra.mxu1 %v398_v6  ;;  %v391_v21 = vld [vmem:[%s887_s3 + $0x30] sm:$0xff]  ;;  %v390_v22 = vld [vmem:[%s887_s3 + $0x28] sm:$0xff]  ;;  %v389_v23 = vld [vmem:[%s887_s3 + $0x20] sm:$0xff] }
  0x13   : > { %641 = vmatpush3.msra.mxu0 %v236_v5  ;;  %642 = vmatprep.mubr.msk.f32.mxu0 %vm247_vm0, %v228_v7  ;;  %v388_v24 = vld [vmem:[%s887_s3 + $0x18] sm:$0xff]  ;;  %v387_v25 = vld [vmem:[%s887_s3 + $0x10] sm:$0xff]  ;;  %v386_v26 = vld [vmem:[%s887_s3 + $0x8] sm:$0xff] }
  0x14   : > { %643 = vmatmul.mubr.msk.f32.vlgmr.msra.gmra.mxu0 %vm247_vm0, %v229_v8  ;;  %654 = vmatprep.subr.mxu0 %v400_v2  ;;  %v385_v27 = vld [vmem:[%s887_s3] sm:$0xff] }
  0x15   : > { %645 = vmatprep.mubr.msk.f32.mxu0 %vm247_vm0, %v230_v9  ;;  %655 = vmatpush3.msra.mxu0 %v400_v2  ;;  %v586_v28 = vld [vmem:[%s886_s2] ss:$0 sm:$0xff] }
  0x16   : > { %656 = vmatprep.subr.mxu0 %v399_v4  ;;  %701 = vmatprep.subr.mxu1 %v397_v11  ;;  %v595_v53 = vld [vmem:[%s888_s4] ss:$0 sm:$0xff] }
  0x17   : > { %657 = vmatpush3.msra.mxu0 %v399_v4  ;;  %717 = vmatpush3.msra.mxu1 %v397_v11 }
  0x18   : > { %646 = vmatmul.mubr.msk.f32.gmra.mxu0 %vm247_vm0, %v231_v10  ;;  %658 = vmatprep.subr.mxu0 %v398_v6 }
  0x19   : > { %648 = vmatprep.mubr.msk.f32.mxu0 %vm247_vm0, %v232_v12  ;;  %659 = vmatpush3.msra.mxu0 %v398_v6 }
  0x1a   : > { %660 = vmatprep.subr.mxu0 %v397_v11  ;;  %702 = vmatprep.subr.mxu1 %v396_v14 }
  0x1b   : > { %661 = vmatpush3.msra.mxu0 %v397_v11  ;;  %718 = vmatpush3.msra.mxu1 %v396_v14 }
  0x1c   : > { %649 = vmatmul.mubr.msk.f32.gmra.mxu0 %vm247_vm0, %v233_v13  ;;  %662 = vmatprep.subr.mxu0 %v396_v14 }
  0x1d   : > { %651 = vmatprep.mubr.msk.f32.mxu0 %vm247_vm0, %v234_v15  ;;  %663 = vmatpush3.msra.mxu0 %v396_v14 }
  0x1e   : > { %664 = vmatprep.subr.mxu0 %v395_v16  ;;  %703 = vmatprep.subr.mxu1 %v395_v16 }
  0x1f   : > { %665 = vmatpush3.msra.mxu0 %v395_v16  ;;  %719 = vmatpush3.msra.mxu1 %v395_v16 }
  0x20   : > { %652 = vmatmul.mubr.msk.f32.gmra.mxu0 %vm247_vm0, %v235_v17  ;;  %666 = vmatprep.subr.mxu0 %v394_v18 }
  0x21   : > { %667 = vmatpush3.msra.mxu0 %v394_v18  ;;  %704 = vmatprep.subr.mxu1 %v394_v18 }
  0x22   : > { %668 = vmatprep.subr.mxu0 %v393_v19  ;;  %720 = vmatpush3.msra.mxu1 %v394_v18 }
  0x23   : > { %669 = vmatpush3.msra.mxu0 %v393_v19  ;;  %705 = vmatprep.subr.mxu1 %v393_v19 }
  0x24   : > { %670 = vmatprep.subr.mxu0 %v392_v20  ;;  %721 = vmatpush3.msra.mxu1 %v393_v19 }
  0x25   : > { %671 = vmatpush3.msra.mxu0 %v392_v20  ;;  %706 = vmatprep.subr.mxu1 %v392_v20 }
  0x26   : > { %672 = vmatprep.subr.mxu0 %v391_v21  ;;  %722 = vmatpush3.msra.mxu1 %v392_v20 }
  0x27   : > { %673 = vmatpush3.msra.mxu0 %v391_v21  ;;  %707 = vmatprep.subr.mxu1 %v391_v21 }
  0x28   : > { %674 = vmatprep.subr.mxu0 %v390_v22  ;;  %723 = vmatpush3.msra.mxu1 %v391_v21 }
  0x29   : > { %675 = vmatpush3.msra.mxu0 %v390_v22  ;;  %708 = vmatprep.subr.mxu1 %v390_v22 }
  0x2a   : > { %676 = vmatprep.subr.mxu0 %v389_v23  ;;  %724 = vmatpush3.msra.mxu1 %v390_v22 }
  0x2b   : > { %677 = vmatpush3.msra.mxu0 %v389_v23  ;;  %709 = vmatprep.subr.mxu1 %v389_v23 }
  0x2c   : > { %725 = vmatpush3.msra.mxu1 %v389_v23  ;;  %678 = vmatprep.subr.mxu0 %v388_v24 }
  0x2d   : > { %710 = vmatprep.subr.mxu1 %v388_v24  ;;  %679 = vmatpush3.msra.mxu0 %v388_v24 }
  0x2e   : > { %726 = vmatpush3.msra.mxu1 %v388_v24  ;;  %680 = vmatprep.subr.mxu0 %v387_v25 }
  0x2f   : > { %711 = vmatprep.subr.mxu1 %v387_v25  ;;  %681 = vmatpush3.msra.mxu0 %v387_v25 }
  0x30   : > { %727 = vmatpush3.msra.mxu1 %v387_v25  ;;  %682 = vmatprep.subr.mxu0 %v386_v26 }
  0x31   : > { %712 = vmatprep.subr.mxu1 %v386_v26  ;;  %683 = vmatpush3.msra.mxu0 %v386_v26 }
  0x32   : > { %728 = vmatpush3.msra.mxu1 %v386_v26  ;;  %684 = vmatprep.subr.mxu0 %v385_v27 }
  0x33   : > { %713 = vmatprep.subr.mxu1 %v385_v27  ;;  %685 = vmatpush3.msra.mxu0 %v385_v27 }
  0x34   : > { %729 = vmatpush3.msra.mxu1 %v385_v27 }
  0xd4   : > { %v644_v29 = vpop.f32.mrf.mxu0 }
  0xd5   : > { %v344_v30 = vadd.f32 %v644_v29, %v586_v28 }
  0xd6   : > { %v338_v31 = vpop.f32.mrf.mxu0 }
  0xd7   : > { %v339_v32 = vadd.f32 %v586_v28, %v338_v31  ;;  %v378_v35 = vmax.f32 %v344_v30, 0.0 }
  0xd8   : > { %v647_v33 = vpop.f32.mrf.mxu0 }
  0xd9   : > { %v377_v34 = vmax.f32 %v339_v32, 0.0  ;;  %v354_v36 = vadd.f32 %v647_v33, %v586_v28 }
  0xda   : > { %v348_v37 = vpop.f32.mrf.mxu0 }
  0xdb   : > { %686 = vmatprep.mubr.f32.mxu0 %v377_v34  ;;  %v349_v38 = vadd.f32 %v586_v28, %v348_v37  ;;  %v380_v41 = vmax.f32 %v354_v36, 0.0 }
  0xdc   : > { %v650_v39 = vpop.f32.mrf.mxu0  ;;  %687 = vmatmul.mubr.f32.vlgmr.msra.gmra.mxu0 %v378_v35 }
  0xdd   : > { %v379_v40 = vmax.f32 %v349_v38, 0.0  ;;  %v364_v42 = vadd.f32 %v650_v39, %v586_v28 }
  0xde   : > { %v358_v43 = vpop.f32.mrf.mxu0 }
  0xdf   : > { %v359_v44 = vadd.f32 %v586_v28, %v358_v43  ;;  %689 = vmatprep.mubr.f32.mxu1 %v379_v40  ;;  %v382_v47 = vmax.f32 %v364_v42, 0.0 }
  0xe0   : > { %v653_v45 = vpop.f32.mrf.mxu0  ;;  %690 = vmatmul.mubr.f32.vlgmr.msra.gmra.mxu1 %v380_v41 }
  0xe1   : > { %v381_v46 = vmax.f32 %v359_v44, 0.0  ;;  %v374_v48 = vadd.f32 %v653_v45, %v586_v28 }
  0xe2   : > { %v368_v49 = vpop.f32.mrf.mxu0 }
  0xe3   : > { %v369_v50 = vadd.f32 %v586_v28, %v368_v49  ;;  %692 = vmatprep.mubr.f32.mxu1 %v381_v46  ;;  %v384_v52 = vmax.f32 %v374_v48, 0.0 }
  0xe4   : > { %693 = vmatmul.mubr.f32.gmra.mxu1 %v382_v47 }
  0xe5   : > { %v383_v51 = vmax.f32 %v369_v50, 0.0 }
  0xe7   : > { %695 = vmatprep.mubr.f32.mxu1 %v383_v51 }
  0xe8   : > { %696 = vmatmul.mubr.f32.gmra.mxu1 %v384_v52 }
 0x19c   : > { %v688_v54 = vpop.f32.mrf.mxu0 }
 0x19d   : > { %v480_v55 = vadd.f32 %v688_v54, %v595_v53 }
 0x19e   : > { %v474_v56 = vpop.f32.mrf.mxu0 }
 0x19f   : > { %514 = vst [vmem:[%s226_s26 + $0x8] sm:$0xff] %v480_v55  ;;  %v475_v57 = vadd.f32 %v595_v53, %v474_v56 }
 0x1a0   : > { %v691_v58 = vpop.f32.mrf.mxu1 }
 0x1a1   : > { %513 = vst [vmem:[%s226_s26] sm:$0xff] %v475_v57  ;;  %v490_v59 = vadd.f32 %v691_v58, %v595_v53 }
 0x1a2   : > { %v484_v60 = vpop.f32.mrf.mxu1 }
 0x1a3   : > { %516 = vst [vmem:[%s226_s26 + $0x18] sm:$0xff] %v490_v59  ;;  %v485_v61 = vadd.f32 %v595_v53, %v484_v60 }
 0x1a4   : > { %v694_v62 = vpop.f32.mrf.mxu1 }
 0x1a5   : > { %515 = vst [vmem:[%s226_s26 + $0x10] sm:$0xff] %v485_v61  ;;  %v500_v63 = vadd.f32 %v694_v62, %v595_v53 }
 0x1a6   : > { %v494_v0 = vpop.f32.mrf.mxu1 }
 0x1a7   : > { %518 = vst [vmem:[%s226_s26 + $0x28] sm:$0xff] %v500_v63  ;;  %v495_v1 = vadd.f32 %v595_v53, %v494_v0 }
 0x1a8   : > { %v697_v2 = vpop.f32.mrf.mxu1 }
 0x1a9   : > { %517 = vst [vmem:[%s226_s26 + $0x20] sm:$0xff] %v495_v1  ;;  %v510_v3 = vadd.f32 %v697_v2, %v595_v53 }
 0x1aa   : > { %v504_v4 = vpop.f32.mrf.mxu1 }
 0x1ab   : > { %520 = vst [vmem:[%s226_s26 + $0x38] sm:$0xff] %v510_v3  ;;  %v505_v5 = vadd.f32 %v595_v53, %v504_v4 }
 0x1ad   : > { %519 = vst [vmem:[%s226_s26 + $0x30] sm:$0xff] %v505_v5 }
 0x1ae PF: > { %s15_s18 = sadd.s32 1, %s744_s18  }
 0x1af   : > { %p12_p4 = scmp.ge.s32.totalorder %s15_s18, 6  }
 0x1b1   :  { %14 = sbr.rel (!%p12_p4) target bundleno = 1 (0x1), region = 70 }

</bundles_post_ra>
